<compile_context>
chip_gen: v5e
topology: v5e:2x2
jax: 0.10.0
libtpu: 0.0.40
codegen_flags: <defaults>
</compile_context>

<pallas_src>
import jax
import jax.numpy as jnp
from jax.experimental import pallas as pl
from jax.experimental.pallas import tpu as pltpu

LANE_W = 512  # lane-dense slab width for the flat path (multiple of 128)


def _relu_kernel(x_ref, o_ref):
    # Elementwise max(x, 0) on the current VMEM tile (VPU only).
    o_ref[...] = jnp.maximum(x_ref[...], jnp.zeros((), x_ref.dtype))


def _sublane_for_dtype(dtype) -> int:
    itemsize = jnp.dtype(dtype).itemsize
    return {4: 8, 2: 16, 1: 32}.get(itemsize, 8)


def _tile_bytes_for_device() -> int:
    """Per-buffer tile budget, scaled with HBM bandwidth per generation."""
    try:
        kind = jax.devices()[0].device_kind.lower()
    except Exception:
        kind = ""
    if "7" in kind:                 # v7x: ~3.2 TB/s, 64 MiB VMEM -> 8 MiB (4x8=32 MiB)
        return 8 * 1024 * 1024
    if "v6" in kind or "6e" in kind:  # v6e: ~1.4 TB/s -> 8 MiB amortizes per-step cost
        return 8 * 1024 * 1024
    if "v5" in kind or "5e" in kind:  # v5e: ~0.8 TB/s -> 2 MiB already <7% overhead
        return 2 * 1024 * 1024
    return 4 * 1024 * 1024


def _relu_2d(x2d: jax.Array, tile_bytes: int) -> jax.Array:
    """Gridded ReLU over the rows of a 2-D array (full-width blocks)."""
    rows, cols = x2d.shape
    dtype = x2d.dtype
    itemsize = jnp.dtype(dtype).itemsize
    sublane = _sublane_for_dtype(dtype)
    row_bytes = max(cols * itemsize, 1)

    # Largest sublane-aligned row tile that fits the per-buffer budget.
    tile_r = max(sublane, (tile_bytes // row_bytes) // sublane * sublane)
    # Keep at least 2 grid steps for large inputs so both v7x TCs get work.
    if rows >= 2 * sublane:
        half_rows = (rows + 1) // 2
        half_aligned = ((half_rows + sublane - 1) // sublane) * sublane
        tile_r = min(tile_r, half_aligned)
    if rows <= tile_r:
        # Single full block; full-array dims are always a legal block shape.
        tile_r = rows

    grid = (pl.cdiv(rows, tile_r),)

    # in + out, double-buffered, plus headroom. Stays <= ~36 MiB even with
    # 8 MiB tiles, i.e. safely under v7x's 64 MiB physical VMEM.
    block_bytes = tile_r * row_bytes
    vmem_limit = max(32 * 1024 * 1024, 4 * block_bytes + 4 * 1024 * 1024)

    return pl.pallas_call(
        _relu_kernel,
        out_shape=jax.ShapeDtypeStruct((rows, cols), dtype),
        grid=grid,
        in_specs=[pl.BlockSpec((tile_r, cols), lambda i: (i, 0))],
        out_specs=pl.BlockSpec((tile_r, cols), lambda i: (i, 0)),
        input_output_aliases={0: 0},  # ReLU is in-place safe
        compiler_params=pltpu.CompilerParams(
            dimension_semantics=("parallel",),
            vmem_limit_bytes=int(vmem_limit),
        ),
    )(x2d)


def relu_pallas(x: jax.Array) -> jax.Array:
    """ReLU over an arbitrarily-shaped tensor via a gridded Pallas kernel."""
    orig_shape = x.shape
    n = x.size
    if n == 0:
        return x
    tile_bytes = _tile_bytes_for_device()

    # Fast path: native last dim already lane-aligned -> only collapse leading
    # dims (layout-trivial), no flatten/reshape round-trip, no copies.
    if x.ndim >= 2 and orig_shape[-1] % 128 == 0:
        x2d = x.reshape(-1, orig_shape[-1])
        return _relu_2d(x2d, tile_bytes).reshape(orig_shape)

    # Flat lane-dense slab when the element count divides evenly: full-width
    # 512-lane stores; exactly one reshape each way, no pad, no slice.
    if n % LANE_W == 0:
        x2d = x.reshape(n // LANE_W, LANE_W)
        return _relu_2d(x2d, tile_bytes).reshape(orig_shape)

    # Ragged fallback: run directly on a (leading, last-dim) view. Blocks are
    # full-width (last dim == full array dim, so the (8,128) rule is satisfied)
    # and the partial last row-block is masked by Pallas -- no pad, no slice.
    if x.ndim < 2:
        x2d = x.reshape(1, n)
    else:
        x2d = x.reshape(-1, orig_shape[-1])
    return _relu_2d(x2d, tile_bytes).reshape(orig_shape)


class Model:
    """JAX mirror of the PyTorch Model: forward(x) = ReLU(x)."""

    def __init__(self):
        pass  # ReLU has no parameters

    def __call__(self, x):
        return relu_pallas(x)


if __name__ == "__main__":
    key = jax.random.PRNGKey(0)
    model = Model()

    # Mimic the source script: input = reshape(input, (-1, 1, 2, 2)).
    raw = jax.random.normal(key, (2, 2, 2), dtype=jnp.float32)
    x = raw.reshape(-1, 1, 2, 2)  # -> (2, 1, 2, 2), NCHW
    out = jax.block_until_ready(model(x))
    assert out.shape == x.shape and out.dtype == x.dtype
    assert bool(jnp.allclose(out, jnp.maximum(x, 0.0))), "mismatch on spec input"

    # Larger case (element count divisible by 512) -> flat lane-dense slab path.
    x2 = jax.random.normal(jax.random.PRNGKey(1), (2, 4, 16, 16), dtype=jnp.float32)
    out2 = jax.block_until_ready(model(x2))
    assert bool(jnp.allclose(out2, jnp.maximum(x2, 0.0))), "mismatch on slab path"

    # Natively lane-aligned case (last dim % 128 == 0) -> zero-copy fast path.
    x3 = jax.random.normal(jax.random.PRNGKey(2), (2, 8, 256), dtype=jnp.float32)
    out3 = jax.block_until_ready(model(x3))
    assert bool(jnp.allclose(out3, jnp.maximum(x3, 0.0))), "mismatch on aligned path"

    print("KERNEL_OK")
</pallas_src>

<mosaic_0001>
module attributes {stable_mosaic.version = 11 : i64} {
  func.func @_relu_kernel(%arg0: i32, %arg1: memref<4x2xf32, #tpu.memory_space<vmem>>, %arg2: memref<4x2xf32, #tpu.memory_space<vmem>>) attributes {dimension_semantics = [#tpu.dimension_semantics<parallel>], iteration_bounds = array<i64: 1>, scalar_prefetch = 0 : i64, scratch_operands = 0 : i64, tpu.core_type = #tpu.core_type<tc>, window_params = [{transform_indices = @transform_0, window_bounds = array<i64: 4, 2>}, {transform_indices = @transform_1, window_bounds = array<i64: 4, 2>}]} {
    %c0 = arith.constant 0 : index
    %c0_0 = arith.constant 0 : index
    %0 = vector.load %arg1[%c0, %c0_0] : memref<4x2xf32, #tpu.memory_space<vmem>>, vector<4x2xf32>
    %cst = arith.constant 0.000000e+00 : f32
    %1 = vector.broadcast %cst : f32 to vector<4x2xf32>
    %2 = arith.maximumf %0, %1 : vector<4x2xf32>
    %c0_1 = arith.constant 0 : index
    %c0_2 = arith.constant 0 : index
    %3 = vector.load %arg2[%c0_1, %c0_2] : memref<4x2xf32, #tpu.memory_space<vmem>>, vector<4x2xf32>
    tpu.vector_store %arg2[%c0_1, %c0_2], %2 {strides = array<i32>} : memref<4x2xf32, #tpu.memory_space<vmem>>, vector<4x2xf32>,
    return
  }
  func.func @transform_0(%arg0: i32) -> (i32, i32) {
    %c0_i32 = arith.constant 0 : i32
    %c0_i32_0 = arith.constant 0 : i32
    return %arg0, %c0_i32 : i32, i32
  }
  func.func @transform_1(%arg0: i32) -> (i32, i32) {
    %c0_i32 = arith.constant 0 : i32
    %c0_i32_0 = arith.constant 0 : i32
    return %arg0, %c0_i32 : i32, i32
  }
}

</mosaic_0001>

<bundles_post_ra>
// kernel: tpu_custom_call.1
= control target key start
LH: loop header
LB: loop body
LE: loop exit
PB: predicated region body
PF: predicated region fallthrough
CT: control target
= control target key end

     0   :  { %vm10_vm0 = vcmask 11264   ;;  %s32_s0 = inlined_call_operand.vmem [shape: f32[4,2], index: 0, kind: input, shape index: {}, may-alias: {0,1}]   ;;  %s33_s1 = inlined_call_operand.vmem [shape: f32[4,2], index: 1, kind: output, shape index: {}, may-alias: {0,1}]  }
   0x1   :  { %v8_v0 = vld [vmem:[%s32_s0] sm:$0xf] }
   0x2   :  { %v9_v1 = vmax.f32 %v8_v0, 0.0 }
   0x4   :  { %11 = vst.msk [vmem:[%s33_s1] sm:$0xf] %vm10_vm0, %v9_v1 }

</bundles_post_ra>
